<compile_context>
chip_gen: v6e
topology: v6e:2x2x1
jax: 0.10.0
libtpu: 0.0.40
codegen_flags: <defaults>
</compile_context>

<pallas_src>
import random

import jax
import jax.numpy as jnp
from jax import lax
from jax.experimental import pallas as pl
from jax.experimental.pallas import tpu as pltpu

_LANES = 128
_CHUNK_ROWS = 16                       # (16, 128) f32 chunk = 2 vregs per array per step
_VMEM_GUARD_BYTES = 12 * 1024 * 1024   # conservative vs v5e's 16 MiB default scoped VMEM


# ----------------------------- Pallas kernels ------------------------------- #

def _tot(x):
    """(rows, 128) -> (1, 1): one sublane reduce + one lane reduce."""
    return jnp.sum(jnp.sum(x, axis=0, keepdims=True), axis=1, keepdims=True)


def _mix1_kernel(gain_ref, s_ref, n_ref, o_ref):
    """Fused torchaudio.functional.add_noise for one (speech, noise) pair.

    gain_ref : (1,) f32 SMEM = 10 ** (-snr_db / 20) (precomputed in wrapper).
    s/n/o    : (R, 128) f32 VMEM slabs of the zero-padded waveforms.
    NOTE: like torchaudio, no epsilon clamp -- all-zero noise gives inf scale.
    """
    R = s_ref.shape[0]
    nfull = R // _CHUNK_ROWS
    tail = R - nfull * _CHUNK_ROWS

    zero = jnp.zeros((_CHUNK_ROWS, _LANES), jnp.float32)

    def body(c, carry):
        acc_s, acc_n = carry
        r0 = pl.multiple_of(c * _CHUNK_ROWS, _CHUNK_ROWS)
        s = s_ref[pl.ds(r0, _CHUNK_ROWS), :]
        n = n_ref[pl.ds(r0, _CHUNK_ROWS), :]
        return (acc_s + s * s, acc_n + n * n)

    acc_s, acc_n = lax.fori_loop(0, nfull, body, (zero, zero))

    es = _tot(acc_s)
    en = _tot(acc_n)
    if tail:  # static ragged-row tail (< _CHUNK_ROWS rows)
        s = s_ref[pl.ds(nfull * _CHUNK_ROWS, tail), :]
        n = n_ref[pl.ds(nfull * _CHUNK_ROWS, tail), :]
        es = es + _tot(s * s)
        en = en + _tot(n * n)

    scale = jnp.sqrt(es / en) * gain_ref[0]            # (1, 1)

    # Second pass re-reads the refs -> streamed vreg-by-vreg, no full-slab
    # values live across both passes (no spills / VMEM temporaries).
    o_ref[...] = s_ref[...] + scale * n_ref[...]


def _mix2_kernel(gains_ref, s_ref, a_ref, b_ref, o_ref):
    """Fused two-interferer chain (both torchaudio add_noise calls in one kernel):

        m   = a + scale_ab * b        scale_ab = sqrt(Ea/Eb)      * gains[0]
        out = s + scale_sm * m        scale_sm = sqrt(Es/E(m))    * gains[1]

    E(m) is expanded algebraically (Ea + 2*scale_ab*<a,b> + scale_ab^2*Eb) so
    the intermediate mix m is never materialized.
    gains_ref : (2,) f32 SMEM = [10**(-snr_inner/20), 10**(-snr_outer/20)].
    """
    R = s_ref.shape[0]
    nfull = R // _CHUNK_ROWS
    tail = R - nfull * _CHUNK_ROWS

    zero = jnp.zeros((_CHUNK_ROWS, _LANES), jnp.float32)

    def body(c, carry):
        acc_s, acc_a, acc_b, acc_x = carry
        r0 = pl.multiple_of(c * _CHUNK_ROWS, _CHUNK_ROWS)
        s = s_ref[pl.ds(r0, _CHUNK_ROWS), :]
        a = a_ref[pl.ds(r0, _CHUNK_ROWS), :]
        b = b_ref[pl.ds(r0, _CHUNK_ROWS), :]
        return (acc_s + s * s, acc_a + a * a, acc_b + b * b, acc_x + a * b)

    acc_s, acc_a, acc_b, acc_x = lax.fori_loop(0, nfull, body, (zero, zero, zero, zero))

    es, ea, eb, ex = _tot(acc_s), _tot(acc_a), _tot(acc_b), _tot(acc_x)
    if tail:  # static ragged-row tail
        s = s_ref[pl.ds(nfull * _CHUNK_ROWS, tail), :]
        a = a_ref[pl.ds(nfull * _CHUNK_ROWS, tail), :]
        b = b_ref[pl.ds(nfull * _CHUNK_ROWS, tail), :]
        es = es + _tot(s * s)
        ea = ea + _tot(a * a)
        eb = eb + _tot(b * b)
        ex = ex + _tot(a * b)

    scale_ab = jnp.sqrt(ea / eb) * gains_ref[0]                         # (1, 1)
    em = ea + 2.0 * scale_ab * ex + scale_ab * scale_ab * eb            # E(a + scale_ab*b)
    scale_sm = jnp.sqrt(es / em) * gains_ref[1]                         # (1, 1)
    c_a = scale_sm
    c_b = scale_sm * scale_ab

    # Mix pass: refs re-read (streamed), pure per-element FMAs.
    o_ref[...] = s_ref[...] + c_a * a_ref[...] + c_b * b_ref[...]


# ------------------------------ JAX wrappers -------------------------------- #

def _pad_params(T):
    R = -(-T // _LANES)     # ceil(T / 128)
    Tp = R * _LANES
    return R, Tp, Tp - T


def _slab(x, pad, R):
    """(T, 1) -> dense (R, 128) f32 slab; pad skipped when T % 128 == 0."""
    v = x[:, 0].astype(jnp.float32)
    if pad:
        v = jnp.pad(v, (0, pad))
    return v.reshape(R, _LANES)


def _unslab(slab, T, Tp, pad):
    flat = slab.reshape(Tp)
    if pad:
        flat = flat[:T]
    return flat.reshape(T, 1)


_SMEM = pl.BlockSpec(memory_space=pltpu.MemorySpace.SMEM)
_VMEM = pl.BlockSpec(memory_space=pltpu.MemorySpace.VMEM)


def _mix1_impl(speech, noise, snr_db):
    T = speech.shape[0]
    R, Tp, pad = _pad_params(T)
    assert 3 * 4 * Tp <= _VMEM_GUARD_BYTES, (
        "waveform too long for the single-block kernel; use a tiled variant")
    s = _slab(speech, pad, R)
    n = _slab(noise, pad, R)
    gain = jnp.reshape(10.0 ** (-jnp.asarray(snr_db, jnp.float32) / 20.0), (1,))
    mixed = pl.pallas_call(
        _mix1_kernel,
        out_shape=jax.ShapeDtypeStruct((R, _LANES), jnp.float32),
        in_specs=[_SMEM, _VMEM, _VMEM],
        out_specs=_VMEM,
    )(gain, s, n)
    return _unslab(mixed, T, Tp, pad)


def _mix2_impl(speech, noise_a, noise_b, snr_inner, snr_outer):
    T = speech.shape[0]
    R, Tp, pad = _pad_params(T)
    assert 4 * 4 * Tp <= _VMEM_GUARD_BYTES, (
        "waveform too long for the single-block kernel; use a tiled variant")
    s = _slab(speech, pad, R)
    a = _slab(noise_a, pad, R)
    b = _slab(noise_b, pad, R)
    gains = jnp.stack([10.0 ** (-jnp.asarray(snr_inner, jnp.float32) / 20.0),
                       10.0 ** (-jnp.asarray(snr_outer, jnp.float32) / 20.0)]).astype(jnp.float32)
    mixed = pl.pallas_call(
        _mix2_kernel,
        out_shape=jax.ShapeDtypeStruct((R, _LANES), jnp.float32),
        in_specs=[_SMEM, _VMEM, _VMEM, _VMEM],
        out_specs=_VMEM,
    )(gains, s, a, b)
    return _unslab(mixed, T, Tp, pad)


_mix1_jit = jax.jit(_mix1_impl)
_mix2_jit = jax.jit(_mix2_impl)


def add_noise_pallas(waveform, noise, snr_db):
    """torchaudio.functional.add_noise for one (T, 1) waveform/noise pair."""
    waveform = jnp.asarray(waveform)
    noise = jnp.asarray(noise)
    assert waveform.shape == noise.shape and waveform.ndim == 2 and waveform.shape[1] == 1
    return _mix1_jit(waveform, noise, jnp.asarray(snr_db, dtype=jnp.float32))


def add_noise2_pallas(speech, noise_a, noise_b, snr_inner, snr_outer):
    """Fused chain: add_noise(speech, add_noise(noise_a, noise_b, snr_inner), snr_outer)."""
    speech = jnp.asarray(speech)
    noise_a = jnp.asarray(noise_a)
    noise_b = jnp.asarray(noise_b)
    assert speech.shape == noise_a.shape == noise_b.shape
    assert speech.ndim == 2 and speech.shape[1] == 1
    return _mix2_jit(speech, noise_a, noise_b,
                     jnp.asarray(snr_inner, dtype=jnp.float32),
                     jnp.asarray(snr_outer, dtype=jnp.float32))


def cut_or_pad_jnp(data, size, dim=0):
    """Pads (with zeros, at the end of dim 0) or trims data along `dim`."""
    if data.shape[dim] < size:
        padding = size - data.shape[dim]
        data = jnp.pad(data, ((0, padding), (0, 0)))
    elif data.shape[dim] > size:
        data = data[:size]
    assert data.shape[dim] == size
    return data


class AddMultiSpkPallas:
    """JAX/Pallas port of AddMultiSpk.  Host-side control flow (random choices,
    length filter) is identical to the PyTorch module; the add_noise math runs
    on TPU, with the common two-interferer chain fused into a single kernel."""

    def __init__(self, speech_dataset=None, snr_target=None, interferer_spk=None):
        self.snr_levels = [snr_target] if snr_target else [-5, 0, 5, 10, 15, 20]
        self.interferer_spk = [interferer_spk] if interferer_spk else [0, 0, 1, 2]
        self.speech_dataset = speech_dataset

    def __call__(self, speech):
        # speech: (T, 1) float32
        if self.speech_dataset is None:
            return speech
        speech_length = speech.shape[0] / 16000
        if speech_length < 2:
            return speech
        num_interferer = random.choice(self.interferer_spk)
        valid = []
        for _ in range(num_interferer):
            entry = random.choice(self.speech_dataset)
            if 25 * 2 <= entry['length'] <= 25 * 10:
                # TODO(synk): real module calls load_audio() on an .mp4/.wav path;
                # here the dataset entry carries a synthetic in-memory waveform.
                valid.append(cut_or_pad_jnp(entry['audio'], speech.shape[0]))
        if not valid:
            return speech
        if len(valid) == 1:
            return add_noise_pallas(speech, valid[0], random.choice(self.snr_levels))
        if len(valid) == 2:
            snr_inner = random.choice([-5, 0, 5, 10, 15])
            snr_outer = random.choice(self.snr_levels)
            return add_noise2_pallas(speech, valid[0], valid[1], snr_inner, snr_outer)
        # > 2 interferers (only if a custom interferer_spk was supplied): chain pairwise.
        sig = valid[0]
        for extra in valid[1:]:
            sig = add_noise_pallas(sig, extra, random.choice([-5, 0, 5, 10, 15]))
        return add_noise_pallas(speech, sig, random.choice(self.snr_levels))


# Pure-JAX reference of torchaudio.functional.add_noise (for correctness checks).
def _add_noise_ref(waveform, noise, snr_db):
    es = jnp.sum(waveform[:, 0].astype(jnp.float32) ** 2)
    en = jnp.sum(noise[:, 0].astype(jnp.float32) ** 2)
    scale = 10.0 ** ((10.0 * (jnp.log10(es) - jnp.log10(en)) - snr_db) / 20.0)
    return waveform + scale * noise


if __name__ == "__main__":
    random.seed(0)  # deterministic host-side choices

    key = jax.random.PRNGKey(0)
    k_sp, k_a, k_b, k_c, k_r1, k_r2 = jax.random.split(key, 6)

    # 2.0 s of 16 kHz speech -> passes the `speech_length >= 2` gate; 32000 is a
    # multiple of 128, so the pad-free fast path is exercised.
    T = 32000
    speech = 0.1 * jax.random.normal(k_sp, (T, 1), dtype=jnp.float32)

    # Synthetic "speech_dataset": 'length' is in video frames (25 fps); all pass
    # the 25*2 <= length <= 25*10 filter.  Audio lengths exercise both the pad
    # and the trim branch of cut_or_pad.
    speech_dataset = [
        {'length': 60,  'audio': 0.1 * jax.random.normal(k_a, (24000, 1), jnp.float32)},
        {'length': 120, 'audio': 0.1 * jax.random.normal(k_b, (48000, 1), jnp.float32)},
        {'length': 200, 'audio': 0.1 * jax.random.normal(k_c, (36000, 1), jnp.float32)},
    ]

    n1 = cut_or_pad_jnp(speech_dataset[0]['audio'], T)
    n2 = cut_or_pad_jnp(speech_dataset[1]['audio'], T)

    # 1) Single-mix kernel vs. pure-JAX reference (pad-free path).
    got1 = add_noise_pallas(speech, n1, 5.0)
    want1 = _add_noise_ref(speech, n1, 5.0)
    assert jnp.allclose(got1, want1, rtol=1e-4, atol=1e-5), "mix1 mismatch vs reference"

    # 2) Fused two-interferer chain vs. two chained reference calls.
    got2 = add_noise2_pallas(speech, n1, n2, 0.0, 5.0)
    want2 = _add_noise_ref(speech, _add_noise_ref(n1, n2, 0.0), 5.0)
    assert jnp.allclose(got2, want2, rtol=1e-4, atol=1e-5), "mix2 mismatch vs reference"

    # 3) Ragged length (not a multiple of 128): exercises the pad branch and
    #    the static ragged-row tail of the energy loop.
    Tr = 33000
    sr = 0.1 * jax.random.normal(k_r1, (Tr, 1), dtype=jnp.float32)
    nr = 0.1 * jax.random.normal(k_r2, (Tr, 1), dtype=jnp.float32)
    got3 = add_noise_pallas(sr, nr, -5.0)
    want3 = _add_noise_ref(sr, nr, -5.0)
    assert jnp.allclose(got3, want3, rtol=1e-4, atol=1e-5), "ragged mix1 mismatch vs reference"

    # 4) Full module forward (interferer_spk=2 forces the fused chained kernel).
    module = AddMultiSpkPallas(speech_dataset=speech_dataset, snr_target=5, interferer_spk=2)
    out = module(speech)
    out = jax.block_until_ready(out)

    assert out.shape == speech.shape and out.dtype == jnp.float32
    print("KERNEL_OK")
</pallas_src>

<mosaic_0001>
module attributes {stable_mosaic.version = 11 : i64} {
  func.func @_mix1_kernel(%arg0: memref<1xf32, #tpu.memory_space<smem>>, %arg1: memref<250x128xf32, #tpu.memory_space<vmem>>, %arg2: memref<250x128xf32, #tpu.memory_space<vmem>>, %arg3: memref<250x128xf32, #tpu.memory_space<vmem>>) attributes {dimension_semantics = [], scalar_prefetch = 0 : i64, scratch_operands = 0 : i64, tpu.core_type = #tpu.core_type<tc>} {
    %cst = arith.constant 0.000000e+00 : f32
    %0 = vector.broadcast %cst : f32 to vector<16x128xf32>
    %c0_i32 = arith.constant 0 : i32
    %c15_i32 = arith.constant 15 : i32
    %1 = arith.addi %c0_i32, %c15_i32 : i32
    %c1_i32 = arith.constant 1 : i32
    %2:2 = scf.for %arg4 = %c0_i32 to %1 step %c1_i32 iter_args(%arg5 = %0, %arg6 = %0) -> (vector<16x128xf32>, vector<16x128xf32>)  : i32 {
      %c16_i32 = arith.constant 16 : i32
      %36 = arith.muli %arg4, %c16_i32 : i32
      %37 = tpu.assume_multiple %36, 16 : i32
      %38 = arith.index_cast %37 : i32 to index
      %c0_18 = arith.constant 0 : index
      %39 = vector.load %arg1[%38, %c0_18] : memref<250x128xf32, #tpu.memory_space<vmem>>, vector<16x128xf32>
      %40 = arith.index_cast %37 : i32 to index
      %c0_19 = arith.constant 0 : index
      %41 = vector.load %arg2[%40, %c0_19] : memref<250x128xf32, #tpu.memory_space<vmem>>, vector<16x128xf32>
      %42 = arith.mulf %39, %39 : vector<16x128xf32>
      %43 = arith.addf %arg5, %42 : vector<16x128xf32>
      %44 = arith.mulf %41, %41 : vector<16x128xf32>
      %45 = arith.addf %arg6, %44 : vector<16x128xf32>
      scf.yield %43, %45 : vector<16x128xf32>, vector<16x128xf32>
    }
    %c15_i32_0 = arith.constant 15 : i32
    %cst_1 = arith.constant dense<0.000000e+00> : vector<128xf32>
    %3 = vector.multi_reduction <add>, %2#0, %cst_1 [0] : vector<16x128xf32> to vector<128xf32>
    %4 = vector.shape_cast %3 : vector<128xf32> to vector<1x128xf32>
    %cst_2 = arith.constant dense<0.000000e+00> : vector<1xf32>
    %5 = vector.multi_reduction <add>, %4, %cst_2 [1] : vector<1x128xf32> to vector<1xf32>
    %6 = vector.shape_cast %5 : vector<1xf32> to vector<1x1xf32>
    %cst_3 = arith.constant dense<0.000000e+00> : vector<128xf32>
    %7 = vector.multi_reduction <add>, %2#1, %cst_3 [0] : vector<16x128xf32> to vector<128xf32>
    %8 = vector.shape_cast %7 : vector<128xf32> to vector<1x128xf32>
    %cst_4 = arith.constant dense<0.000000e+00> : vector<1xf32>
    %9 = vector.multi_reduction <add>, %8, %cst_4 [1] : vector<1x128xf32> to vector<1xf32>
    %10 = vector.shape_cast %9 : vector<1xf32> to vector<1x1xf32>
    %c240 = arith.constant 240 : index
    %c0 = arith.constant 0 : index
    %11 = vector.load %arg1[%c240, %c0] : memref<250x128xf32, #tpu.memory_space<vmem>>, vector<10x128xf32>
    %c240_5 = arith.constant 240 : index
    %c0_6 = arith.constant 0 : index
    %12 = vector.load %arg2[%c240_5, %c0_6] : memref<250x128xf32, #tpu.memory_space<vmem>>, vector<10x128xf32>
    %13 = arith.mulf %11, %11 : vector<10x128xf32>
    %cst_7 = arith.constant dense<0.000000e+00> : vector<128xf32>
    %14 = vector.multi_reduction <add>, %13, %cst_7 [0] : vector<10x128xf32> to vector<128xf32>
    %15 = vector.shape_cast %14 : vector<128xf32> to vector<1x128xf32>
    %cst_8 = arith.constant dense<0.000000e+00> : vector<1xf32>
    %16 = vector.multi_reduction <add>, %15, %cst_8 [1] : vector<1x128xf32> to vector<1xf32>
    %17 = vector.shape_cast %16 : vector<1xf32> to vector<1x1xf32>
    %18 = arith.addf %6, %17 : vector<1x1xf32>
    %19 = arith.mulf %12, %12 : vector<10x128xf32>
    %cst_9 = arith.constant dense<0.000000e+00> : vector<128xf32>
    %20 = vector.multi_reduction <add>, %19, %cst_9 [0] : vector<10x128xf32> to vector<128xf32>
    %21 = vector.shape_cast %20 : vector<128xf32> to vector<1x128xf32>
    %cst_10 = arith.constant dense<0.000000e+00> : vector<1xf32>
    %22 = vector.multi_reduction <add>, %21, %cst_10 [1] : vector<1x128xf32> to vector<1xf32>
    %23 = vector.shape_cast %22 : vector<1xf32> to vector<1x1xf32>
    %24 = arith.addf %10, %23 : vector<1x1xf32>
    %25 = arith.divf %18, %24 : vector<1x1xf32>
    %26 = math.sqrt %25 : vector<1x1xf32>
    %c0_11 = arith.constant 0 : index
    %27 = memref.load %arg0[%c0_11] : memref<1xf32, #tpu.memory_space<smem>>
    %28 = vector.broadcast %27 : f32 to vector<1x1xf32>
    %29 = arith.mulf %26, %28 : vector<1x1xf32>
    %c0_12 = arith.constant 0 : index
    %c0_13 = arith.constant 0 : index
    %30 = vector.load %arg1[%c0_12, %c0_13] : memref<250x128xf32, #tpu.memory_space<vmem>>, vector<250x128xf32>
    %c0_14 = arith.constant 0 : index
    %c0_15 = arith.constant 0 : index
    %31 = vector.load %arg2[%c0_14, %c0_15] : memref<250x128xf32, #tpu.memory_space<vmem>>, vector<250x128xf32>
    %32 = vector.broadcast %29 : vector<1x1xf32> to vector<250x128xf32>
    %33 = arith.mulf %32, %31 : vector<250x128xf32>
    %34 = arith.addf %30, %33 : vector<250x128xf32>
    %c0_16 = arith.constant 0 : index
    %c0_17 = arith.constant 0 : index
    %35 = vector.load %arg3[%c0_16, %c0_17] : memref<250x128xf32, #tpu.memory_space<vmem>>, vector<250x128xf32>
    tpu.vector_store %arg3[%c0_16, %c0_17], %34 {strides = array<i32>} : memref<250x128xf32, #tpu.memory_space<vmem>>, vector<250x128xf32>,
    return
  }
}

</mosaic_0001>

<bundles_post_ra>
// kernel: _mix1_impl.1
= control target key start
LH: loop header
LB: loop body
LE: loop exit
PB: predicated region body
PF: predicated region fallthrough
CT: control target
= control target key end

     0   :  { %v347_v0 = vmov 0.0   ;;  %v351_v1 = vmov 0.0   ;;  %v355_v2 = vmov 0.0   ;;  %v359_v3 = vmov 0.0   ;;  %s390_s14 = smov 0   ;;  %s791_s0 = inlined_call_operand.<no memory space> [shape: f32[1], index: 0, kind: input, shape index: {}]   ;;  %s792_s1 = inlined_call_operand.vmem [shape: f32[250,128], index: 1, kind: input, shape index: {}]   ;;  %s793_s2 = inlined_call_operand.vmem [shape: f32[250,128], index: 2, kind: input, shape index: {}]   ;;  %s794_s3 = inlined_call_operand.vmem [shape: f32[250,128], index: 3, kind: output, shape index: {}]  }
   0x1   :  { %8 = sst [smem:[#allocation2]] %s791_s0 }
   0x2 LB: > { %s282_s15 = sshll.u32 %s365_s14, 4  ;;  %s20_s14 = sadd.s32 1, %s365_s14   ;;  %s365_s14 = sphi %s390_s14, %s20_s14   ;;  %v361_v3 = vphi %v359_v3, %v360_v3   ;;  %v357_v2 = vphi %v355_v2, %v356_v2   ;;  %v353_v1 = vphi %v351_v1, %v352_v1   ;;  %v349_v0 = vphi %v347_v0, %v348_v0  }
   0x3   : > { %s26_s18 = scalar_lea.vmem %s792_s1, %s282_s15  ;;  %s29_s20 = scalar_lea.vmem %s793_s2, %s282_s15 }
   0x4   : > { %v27_v4 = vld [vmem:[%s26_s18] sm:$0xff]  ;;  %v28_v5 = vld [vmem:[%s26_s18 + $0x8] sm:$0xff]  ;;  %p17_p0 = scmp.ge.s32.totalorder %s20_s14, 15  }
   0x5   : > { %v30_v6 = vld [vmem:[%s29_s20] sm:$0xff]  ;;  %v31_v7 = vld [vmem:[%s29_s20 + $0x8] sm:$0xff]  ;;  %v32_v8 = vmul.f32 %v27_v4, %v27_v4  ;;  %v33_v9 = vmul.f32 %v28_v5, %v28_v5  ;;  %v404_v17 = vld [vmem:[%s793_s2 + $0xf0] sm:$0xff] (%p17_p0)  ;;  %vm64_vm0 = vcmask (%p17_p0), 1041408   ;;  %s98_s29 = sld [smem:[#allocation2]] (%p17_p0) }
   0x6   : > { %v36_v10 = vmul.f32 %v30_v6, %v30_v6  ;;  %v37_v11 = vmul.f32 %v31_v7, %v31_v7  ;;  %19 = sbr.rel (!%p17_p0) target bundleno = 2 (0x2), region = 41  ;;  %v409_v18 = vld [vmem:[%s793_s2 + $0xf8] sm:$0x3] (%p17_p0)  ;;  %v414_v20 = vld [vmem:[%s792_s1 + $0xf0] sm:$0xff] (%p17_p0)  ;;  %v76_v21 = vmul.f32 (%p17_p0), %v404_v17, %v404_v17  ;;  %v135_v6 = vld [vmem:[%s793_s2 + $0x20] sm:$0xff] (%p17_p0) }
   0x7   : > { %v34_v12 = vadd.f32 %v361_v3, %v32_v8   ;;  %v35_v13 = vadd.f32 %v357_v2, %v33_v9   ;;  %v77_v22 = vmul.f32 (%p17_p0), %v409_v18, %v409_v18  ;;  %v423_v23 = vld [vmem:[%s792_s1 + $0xf8] sm:$0x3] (%p17_p0)  ;;  %v62_v24 = vmul.f32 (%p17_p0), %v414_v20, %v414_v20  ;;  %v136_v7 = vld [vmem:[%s793_s2 + $0x28] sm:$0xff] (%p17_p0)  ;;  %v137_v8 = vld [vmem:[%s793_s2 + $0x30] sm:$0xff] (%p17_p0) }
   0x8   : > { %v38_v14 = vadd.f32 %v353_v1, %v36_v10   ;;  %v39_v15 = vadd.f32 %v349_v0, %v37_v11   ;;  %v63_v27 = vmul.f32 (%p17_p0), %v423_v23, %v423_v23  ;;  %v134_v4 = vld [vmem:[%s793_s2 + $0x18] sm:$0xff] (%p17_p0)  ;;  %v139_v11 = vld [vmem:[%s793_s2 + $0x40] sm:$0xff] (%p17_p0) }
   0x9   : > { %v356_v2 = vmov %v35_v13   ;;  %v360_v3 = vmov %v34_v12   ;;  %v40_v19 = vadd.f32 (%p17_p0), %v35_v13, %v34_v12  ;;  %v78_v28 = vsel (%p17_p0), %vm64_vm0, %v77_v22, 0.0  ;;  %v138_v10 = vld [vmem:[%s793_s2 + $0x38] sm:$0xff] (%p17_p0)  ;;  %v140_v12 = vld [vmem:[%s793_s2 + $0x48] sm:$0xff] (%p17_p0)  ;;  %v145_v22 = vld [vmem:[%s793_s2 + $0x70] sm:$0xff] (%p17_p0) }
   0xa   : > { %v348_v0 = vmov %v39_v15   ;;  %v352_v1 = vmov %v38_v14   ;;  %v49_v16 = vadd.f32 (%p17_p0), %v39_v15, %v38_v14  ;;  %v79_v30 = vadd.f32 (%p17_p0), %v78_v28, %v76_v21  ;;  %v132_v2 = vld [vmem:[%s793_s2 + $0x8] sm:$0xff] (%p17_p0)  ;;  %v133_v3 = vld [vmem:[%s793_s2 + $0x10] sm:$0xff] (%p17_p0)  ;;  %v142_v15 = vld [vmem:[%s793_s2 + $0x58] sm:$0xff] (%p17_p0) }
   0xb   :  { %v41_v26 = vrot.slane %v40_v19, 4  ;;  %v65_v32 = vsel %vm64_vm0, %v63_v27, 0.0  ;;  %v99_v0 = vstv %s98_s29  ;;  %v131_v1 = vld [vmem:[%s793_s2] sm:$0xff]  ;;  %v141_v14 = vld [vmem:[%s793_s2 + $0x50] sm:$0xff]  ;;  %v144_v21 = vld [vmem:[%s793_s2 + $0x68] sm:$0xff] }
   0xc   :  { %v50_v25 = vrot.slane %v49_v16, 4  ;;  %v66_v33 = vadd.f32 %v65_v32, %v62_v24  ;;  %v80_v35 = vrot.slane %v79_v30, 4  ;;  %v146_v24 = vld [vmem:[%s793_s2 + $0x78] sm:$0xff]  ;;  %v149_v27 = vld [vmem:[%s793_s2 + $0x90] sm:$0xff] }
   0xd   :  { %v42_v31 = vadd.f32 %v41_v26, %v40_v19  ;;  %v148_v26 = vld [vmem:[%s793_s2 + $0x88] sm:$0xff]  ;;  %v150_v32 = vld [vmem:[%s793_s2 + $0x98] sm:$0xff] }
   0xe   :  { %v51_v29 = vadd.f32 %v50_v25, %v49_v16  ;;  %v67_v37 = vrot.slane %v66_v33, 4  ;;  %v81_v39 = vadd.f32 %v80_v35, %v79_v30  ;;  %v143_v16 = vld [vmem:[%s793_s2 + $0x60] sm:$0xff] }
   0xf   :  { %v43_v36 = vrot.slane %v42_v31, 2  ;;  %v147_v25 = vld [vmem:[%s793_s2 + $0x80] sm:$0xff] }
  0x10   :  { %v52_v34 = vrot.slane %v51_v29, 2  ;;  %v68_v41 = vadd.f32 %v67_v37, %v66_v33  ;;  %v82_v43 = vrot.slane %v81_v39, 2  ;;  %v151_v33 = vld [vmem:[%s793_s2 + $0xa0] sm:$0xff] }
  0x11   :  { %v44_v40 = vadd.f32 %v43_v36, %v42_v31 }
  0x12   :  { %v53_v38 = vadd.f32 %v52_v34, %v51_v29  ;;  %v69_v45 = vrot.slane %v68_v41, 2  ;;  %v83_v47 = vadd.f32 %v82_v43, %v81_v39  ;;  %v152_v34 = vld [vmem:[%s793_s2 + $0xa8] sm:$0xff]  ;;  %v153_v39 = vld [vmem:[%s793_s2 + $0xb0] sm:$0xff] }
  0x13   :  { %v45_v44 = vrot.slane %v44_v40, 1 }
  0x14   :  { %v54_v42 = vrot.slane %v53_v38, 1  ;;  %v70_v49 = vadd.f32 %v69_v45, %v68_v41  ;;  %v84_v50 = vrot.slane %v83_v47, 1  ;;  %v155_v41 = vld [vmem:[%s793_s2 + $0xc0] sm:$0xff] }
  0x15   :  { %v46_v48 = vadd.f32 %v45_v44, %v44_v40  ;;  %v154_v40 = vld [vmem:[%s793_s2 + $0xb8] sm:$0xff] }
  0x16   :  { %v55_v46 = vadd.f32 %v54_v42, %v53_v38  ;;  %v71_v51 = vrot.slane %v70_v49, 1  ;;  %v85_v52 = vadd.f32 %v84_v50, %v83_v47  ;;  %v102_v47 = vld [vmem:[%s792_s1 + $0x8] sm:$0xff] }
  0x17   :  { %47 = vadd.xlane.f32.xlu1 %v46_v48  ;;  %v103_v48 = vld [vmem:[%s792_s1 + $0x10] sm:$0xff]  ;;  %v156_v50 = vld [vmem:[%s793_s2 + $0xc8] sm:$0xff] }
  0x18   :  { %56 = vadd.xlane.f32.xlu0 %v55_v46  ;;  %v72_v53 = vadd.f32 %v71_v51, %v70_v49  ;;  %v101_v46 = vld [vmem:[%s792_s1] sm:$0xff]  ;;  %v104_v49 = vld [vmem:[%s792_s1 + $0x18] sm:$0xff]  ;;  %v157_v51 = vld [vmem:[%s793_s2 + $0xd0] sm:$0xff] }
  0x1b   :  { %73 = vadd.xlane.f32.xlu1 %v72_v53 }
  0x1c   :  { %86 = vadd.xlane.f32.xlu0 %v85_v52  ;;  %v158_v52 = vld [vmem:[%s793_s2 + $0xd8] sm:$0xff] }
  0xa0   :  { %v48_v57 = vpop.xlane.xlu1 %47 }
  0xa1   :  { %v57_v54 = vpop.xlane.xlu0 %56 }
  0xa4   :  { %v74_v58 = vpop.xlane.xlu1 %73 }
  0xa5   :  { %v87_v55 = vpop.xlane.xlu0 %86  ;;  %v75_v59 = vadd.f32 %v74_v58, %v48_v57  ;;  %v105_v57 = vld [vmem:[%s792_s1 + $0x20] sm:$0xff]  ;;  %v106_v58 = vld [vmem:[%s792_s1 + $0x28] sm:$0xff] }
  0xa6   :  { %v88_v56 = vadd.f32 %v87_v55, %v57_v54 }
  0xa8   :  { %323 = vrcp.f32 %v88_v56 }
  0xb5   :  { %v324_v60 = vpop.eup %323 }
  0xb6   :  { %v90_v61 = vmul.f32 %v324_v60, %v75_v59  ;;  %v107_v59 = vld [vmem:[%s792_s1 + $0x30] sm:$0xff]  ;;  %v159_v60 = vld [vmem:[%s793_s2 + $0xe0] sm:$0xff] }
  0xb8   :  { %325 = vrsqrt.f32 %v90_v61  ;;  %vm93_vm1 = vcmp.eq.f32.partialorder %v90_v61, inf  ;;  %v96_v5 = vand.u32 2147483648, %v90_v61  ;;  %vm95_vm2 = vcmp.eq.f32.partialorder %v90_v61, 0.0 }
  0xc5   :  { %v326_v62 = vpop.eup %325 }
  0xc6   :  { %v92_v63 = vmul.f32 %v326_v62, %v90_v61 }
  0xc8   :  { %v94_v9 = vsel %vm93_vm1, %v90_v61, %v92_v63  ;;  %v160_v61 = vld [vmem:[%s793_s2 + $0xe8] sm:$0xff] }
  0xc9   :  { %v97_v13 = vsel %vm95_vm2, %v96_v5, %v94_v9  ;;  %v111_v9 = vld [vmem:[%s792_s1 + $0x50] sm:$0xff] }
  0xca   :  { %v468_v19 = vmul.f32 %v99_v0, %v97_v13 }
  0xcc   :  { %v161_v28 = vmul.f32 %v131_v1, %v468_v19  ;;  %v162_v29 = vmul.f32 %v132_v2, %v468_v19  ;;  %v163_v30 = vmul.f32 %v133_v3, %v468_v19  ;;  %v164_v31 = vmul.f32 %v134_v4, %v468_v19  ;;  %v108_v2 = vld [vmem:[%s792_s1 + $0x38] sm:$0xff]  ;;  %v109_v3 = vld [vmem:[%s792_s1 + $0x40] sm:$0xff]  ;;  %v110_v4 = vld [vmem:[%s792_s1 + $0x48] sm:$0xff] }
  0xcd   :  { %v165_v35 = vmul.f32 %v135_v6, %v468_v19  ;;  %v166_v36 = vmul.f32 %v136_v7, %v468_v19  ;;  %v167_v37 = vmul.f32 %v137_v8, %v468_v19  ;;  %v168_v38 = vmul.f32 %v138_v10, %v468_v19  ;;  %v112_v10 = vld [vmem:[%s792_s1 + $0x58] sm:$0xff] }
  0xce   :  { %v169_v42 = vmul.f32 %v139_v11, %v468_v19  ;;  %v170_v43 = vmul.f32 %v140_v12, %v468_v19  ;;  %v171_v44 = vmul.f32 %v141_v14, %v468_v19  ;;  %v172_v45 = vmul.f32 %v142_v15, %v468_v19  ;;  %v113_v11 = vld [vmem:[%s792_s1 + $0x60] sm:$0xff] }
  0xcf   :  { %v173_v53 = vmul.f32 %v143_v16, %v468_v19  ;;  %v174_v54 = vmul.f32 %v144_v21, %v468_v19  ;;  %v175_v55 = vmul.f32 %v145_v22, %v468_v19  ;;  %v176_v56 = vmul.f32 %v146_v24, %v468_v19  ;;  %v114_v16 = vld [vmem:[%s792_s1 + $0x68] sm:$0xff]  ;;  %v115_v21 = vld [vmem:[%s792_s1 + $0x70] sm:$0xff]  ;;  %v116_v22 = vld [vmem:[%s792_s1 + $0x78] sm:$0xff] }
  0xd0   :  { %v559_v62 = vmul.f32 %v147_v25, %v468_v19  ;;  %v562_v63 = vmul.f32 %v148_v26, %v468_v19  ;;  %v565_v0 = vmul.f32 %v149_v27, %v468_v19  ;;  %v568_v1 = vmul.f32 %v150_v32, %v468_v19  ;;  %v117_v32 = vld [vmem:[%s792_s1 + $0x80] sm:$0xff] }
  0xd1   :  { %v580_v5 = vmul.f32 %v151_v33, %v468_v19  ;;  %v583_v6 = vmul.f32 %v152_v34, %v468_v19  ;;  %v586_v7 = vmul.f32 %v153_v39, %v468_v19  ;;  %v589_v8 = vmul.f32 %v154_v40, %v468_v19  ;;  %v118_v33 = vld [vmem:[%s792_s1 + $0x88] sm:$0xff]  ;;  %v119_v34 = vld [vmem:[%s792_s1 + $0x90] sm:$0xff] }
  0xd2   :  { %v601_v12 = vmul.f32 %v155_v41, %v468_v19  ;;  %v604_v13 = vmul.f32 %v156_v50, %v468_v19  ;;  %v607_v14 = vmul.f32 %v157_v51, %v468_v19  ;;  %v610_v15 = vmul.f32 %v158_v52, %v468_v19  ;;  %v122_v50 = vld [vmem:[%s792_s1 + $0xa8] sm:$0xff] }
  0xd3   :  { %v622_v24 = vmul.f32 %v159_v60, %v468_v19  ;;  %v625_v25 = vmul.f32 %v160_v61, %v468_v19  ;;  %v629_v26 = vmul.f32 %v468_v19, %v404_v17  ;;  %v633_v27 = vmul.f32 %v468_v19, %v409_v18  ;;  %v120_v18 = vld [vmem:[%s792_s1 + $0x98] sm:$0xff]  ;;  %v121_v19 = vld [vmem:[%s792_s1 + $0xa0] sm:$0xff] }
  0xd4   :  { %v193_v39 = vadd.f32 %v161_v28, %v101_v46  ;;  %v194_v40 = vadd.f32 %v162_v29, %v102_v47  ;;  %v195_v17 = vadd.f32 %v163_v30, %v103_v48  ;;  %v196_v41 = vadd.f32 %v164_v31, %v104_v49  ;;  %v123_v28 = vld [vmem:[%s792_s1 + $0xb0] sm:$0xff]  ;;  %v124_v29 = vld [vmem:[%s792_s1 + $0xb8] sm:$0xff]  ;;  %v125_v30 = vld [vmem:[%s792_s1 + $0xc0] sm:$0xff] }
  0xd5   :  { %v197_v51 = vadd.f32 %v165_v35, %v105_v57  ;;  %v198_v52 = vadd.f32 %v166_v36, %v106_v58  ;;  %v199_v60 = vadd.f32 %v167_v37, %v107_v59  ;;  %v200_v61 = vadd.f32 %v168_v38, %v108_v2  ;;  %v126_v35 = vld [vmem:[%s792_s1 + $0xc8] sm:$0xff]  ;;  %v127_v36 = vld [vmem:[%s792_s1 + $0xd0] sm:$0xff]  ;;  %v128_v37 = vld [vmem:[%s792_s1 + $0xd8] sm:$0xff] }
  0xd6   :  { %v201_v31 = vadd.f32 %v169_v42, %v109_v3  ;;  %v202_v46 = vadd.f32 %v170_v43, %v110_v4  ;;  %v203_v47 = vadd.f32 %v171_v44, %v111_v9  ;;  %v204_v48 = vadd.f32 %v172_v45, %v112_v10  ;;  %225 = vst [vmem:[%s794_s3] sm:$0xff] %v193_v39  ;;  %v129_v45 = vld [vmem:[%s792_s1 + $0xe0] sm:$0xff]  ;;  %v130_v49 = vld [vmem:[%s792_s1 + $0xe8] sm:$0xff] }
  0xd7   :  { %226 = vst [vmem:[%s794_s3 + $0x8] sm:$0xff] %v194_v40  ;;  %227 = vst [vmem:[%s794_s3 + $0x10] sm:$0xff] %v195_v17  ;;  %v205_v38 = vadd.f32 %v173_v53, %v113_v11  ;;  %v206_v42 = vadd.f32 %v174_v54, %v114_v16  ;;  %v207_v43 = vadd.f32 %v175_v55, %v115_v21 }
  0xd8   :  { %228 = vst [vmem:[%s794_s3 + $0x18] sm:$0xff] %v196_v41  ;;  %v208_v44 = vadd.f32 %v176_v56, %v116_v22  ;;  %229 = vst [vmem:[%s794_s3 + $0x20] sm:$0xff] %v197_v51  ;;  %v209_v53 = vadd.f32 %v559_v62, %v117_v32  ;;  %v210_v54 = vadd.f32 %v562_v63, %v118_v33 }
  0xd9   :  { %230 = vst [vmem:[%s794_s3 + $0x28] sm:$0xff] %v198_v52  ;;  %231 = vst [vmem:[%s794_s3 + $0x30] sm:$0xff] %v199_v60  ;;  %v211_v55 = vadd.f32 %v565_v0, %v119_v34  ;;  %v212_v56 = vadd.f32 %v568_v1, %v120_v18  ;;  %v213_v57 = vadd.f32 %v580_v5, %v121_v19 }
  0xda   :  { %232 = vst [vmem:[%s794_s3 + $0x38] sm:$0xff] %v200_v61  ;;  %233 = vst [vmem:[%s794_s3 + $0x40] sm:$0xff] %v201_v31  ;;  %v214_v58 = vadd.f32 %v583_v6, %v122_v50  ;;  %v215_v59 = vadd.f32 %v586_v7, %v123_v28  ;;  %v216_v62 = vadd.f32 %v589_v8, %v124_v29 }
  0xdb   :  { %234 = vst [vmem:[%s794_s3 + $0x48] sm:$0xff] %v202_v46  ;;  %235 = vst [vmem:[%s794_s3 + $0x50] sm:$0xff] %v203_v47  ;;  %v217_v63 = vadd.f32 %v601_v12, %v125_v30  ;;  %v218_v0 = vadd.f32 %v604_v13, %v126_v35  ;;  %v219_v1 = vadd.f32 %v607_v14, %v127_v36 }
  0xdc   :  { %236 = vst [vmem:[%s794_s3 + $0x58] sm:$0xff] %v204_v48  ;;  %237 = vst [vmem:[%s794_s3 + $0x60] sm:$0xff] %v205_v38  ;;  %v220_v2 = vadd.f32 %v610_v15, %v128_v37  ;;  %v221_v3 = vadd.f32 %v622_v24, %v129_v45  ;;  %v222_v4 = vadd.f32 %v625_v25, %v130_v49 }
  0xdd   :  { %238 = vst [vmem:[%s794_s3 + $0x68] sm:$0xff] %v206_v42  ;;  %239 = vst [vmem:[%s794_s3 + $0x70] sm:$0xff] %v207_v43  ;;  %v223_v5 = vadd.f32 %v629_v26, %v414_v20  ;;  %v224_v6 = vadd.f32 %v633_v27, %v423_v23 }
  0xde   :  { %240 = vst [vmem:[%s794_s3 + $0x78] sm:$0xff] %v208_v44  ;;  %241 = vst [vmem:[%s794_s3 + $0x80] sm:$0xff] %v209_v53 }
  0xdf   :  { %242 = vst [vmem:[%s794_s3 + $0x88] sm:$0xff] %v210_v54  ;;  %243 = vst [vmem:[%s794_s3 + $0x90] sm:$0xff] %v211_v55 }
  0xe0   :  { %244 = vst [vmem:[%s794_s3 + $0x98] sm:$0xff] %v212_v56  ;;  %245 = vst [vmem:[%s794_s3 + $0xa0] sm:$0xff] %v213_v57 }
  0xe1   :  { %246 = vst [vmem:[%s794_s3 + $0xa8] sm:$0xff] %v214_v58  ;;  %247 = vst [vmem:[%s794_s3 + $0xb0] sm:$0xff] %v215_v59 }
  0xe2   :  { %248 = vst [vmem:[%s794_s3 + $0xb8] sm:$0xff] %v216_v62  ;;  %249 = vst [vmem:[%s794_s3 + $0xc0] sm:$0xff] %v217_v63 }
  0xe3   :  { %250 = vst [vmem:[%s794_s3 + $0xc8] sm:$0xff] %v218_v0  ;;  %251 = vst [vmem:[%s794_s3 + $0xd0] sm:$0xff] %v219_v1 }
  0xe4   :  { %252 = vst [vmem:[%s794_s3 + $0xd8] sm:$0xff] %v220_v2  ;;  %253 = vst [vmem:[%s794_s3 + $0xe0] sm:$0xff] %v221_v3 }
  0xe5   :  { %254 = vst [vmem:[%s794_s3 + $0xe8] sm:$0xff] %v222_v4  ;;  %255 = vst [vmem:[%s794_s3 + $0xf0] sm:$0xff] %v223_v5 }
  0xe6   :  { %256 = vst [vmem:[%s794_s3 + $0xf8] sm:$0x3] %v224_v6 }

</bundles_post_ra>
